<compile_context>
chip_gen: v5e
topology: v5e:2x2
jax: 0.10.0
libtpu: 0.0.40
codegen_flags: <defaults>
</compile_context>

<pallas_src>
import functools

import jax
import jax.numpy as jnp
from jax import lax
from jax.experimental import pallas as pl
from jax.experimental.pallas import tpu as pltpu


def _cdiv(a, b):
    return -(-a // b)


def _round_up(x, m):
    return ((x + m - 1) // m) * m


def _vmem_capacity_bytes():
    try:
        return int(pltpu.get_tpu_info().vmem_capacity_bytes)
    except Exception:
        return 64 * 1024 * 1024       # be conservative (v7x-sized VMEM)


def _ce_kernel(logits_ref, targets_ref, out_ref, *, ignore_val):
    """One spatial-tile accumulation step.

    logits_ref : (BN, C, TB) block, input dtype (f32/bf16), class axis on
                 sublanes, pixels lane-dense.  The last spatial tile may be a
                 partial edge block; its out-of-bounds lanes hold garbage that
                 is masked below via the sentinel-padded targets.
    targets_ref: (BN, TB) int16/int32 block (== ignore_val marks ignored,
                 ragged-tail and padded-batch pixels).
    out_ref    : (BN, TB) f32 partial-sum accumulator, resident in VMEM across
                 the sequential spatial-tile axis.
    """
    si = pl.program_id(2)

    @pl.when(si == 0)
    def _():
        out_ref[...] = jnp.zeros_like(out_ref)

    x = logits_ref[...].astype(jnp.float32)        # no-op cast for f32 inputs
    t = targets_ref[...].astype(jnp.int32)         # (BN, TB)

    # Pass 1: max over the class (sublane) axis.
    m = jnp.max(x, axis=1, keepdims=True)          # (BN, 1, TB)

    # Pass 2 (fused): the shifted logits feed BOTH the exp-sum and the
    # target-logit selection, so x is not swept a third time and no raw-x
    # third temporary is created.
    xm = x - m                                     # (BN, C, TB) f32 (counted in sizing)
    sum_exp = jnp.sum(jnp.exp(xm), axis=1)         # (BN, TB)
    cls = lax.broadcasted_iota(jnp.int32, xm.shape, 1)   # sublane iota: cheap
    picked = jnp.sum(jnp.where(cls == t[:, None, :], xm, 0.0), axis=1)

    # loss = logsumexp(x) - x[target] = log(sum_exp) - (x[target] - m)
    # NOTE: out-of-range targets (t >= C) give picked == 0 (loss = lse) instead
    # of PyTorch's runtime assertion.
    valid = t != ignore_val
    out_ref[...] += jnp.where(valid, jnp.log(sum_exp) - picked, 0.0)


@functools.partial(jax.jit, static_argnames=("ignore_index", "max_tile_pixels"))
def cross_entropy_loss_2d(outputs, targets, ignore_index=None,
                          max_tile_pixels=64 * 1024):
    """Forward of CrossEntropyLoss2d: mean over pixels of NLL(log_softmax(x, 1)).

    outputs: (N, C, H, W) float logits (f32 or bf16); targets: (N, H, W) int.
    """
    # TODO(synk): the per-class `weight` vector of the constructor is not
    # implemented (weight=None path, matching the module's default).
    n, c, h, w = outputs.shape
    hw = h * w
    isz = jnp.dtype(outputs.dtype).itemsize
    # NOTE: with ignore_index=None the sentinel is -1; an (invalid) target of
    # -1 would be silently dropped from the numerator (PyTorch would raise).
    ignore_val = -1 if ignore_index is None else int(ignore_index)

    # Native layout, zero copies of the big tensor: (N, C, HW) logits.
    logits = outputs.reshape(n, c, hw)
    tgt = targets.reshape(n, hw).astype(jnp.int32)

    # Shrink the secondary HBM stream: int16 targets when ids + sentinel fit.
    if c <= 32000 and -32768 <= ignore_val <= 32767:
        tgt = tgt.astype(jnp.int16)
    tsz = jnp.dtype(tgt.dtype).itemsize

    # Fold the batch into the block (keeps every BlockSpec's trailing dims equal
    # to full array dims -> no (8,128)/packed-tiling violations, no transposes).
    if n <= 8:
        bn = n
    else:
        bn = 16 if tsz == 2 else 8     # packed-int16 blocks want sublane mult of 16
    n_chunks = _cdiv(n, bn)
    n_pad = n_chunks * bn

    # --- VMEM-aware tile sizing (counts the in-kernel f32 temporaries). -------
    vmem_cap = _vmem_capacity_bytes()
    budget = (48 << 20) if vmem_cap >= (100 << 20) else (26 << 20)
    # Per-pixel VMEM bytes: double-buffered logits tile + ~2 full-size f32
    # temporaries (cast + shifted logits) + double-buffered targets + resident
    # f32 accumulator.  (+16 on C absorbs sublane padding for small/odd C.)
    bpp = bn * ((c + 16) * (2 * isz + 2 * 4) + 2 * tsz + 2 * 4)
    tb = max(128, (budget // bpp) // 128 * 128)
    tb = min(tb, max(128, _round_up(max_tile_pixels, 128)))
    # Keep >=4 spatial tiles whenever the image allows it: double-buffered
    # pipelining + the v7x 2-TensorCore split even at N == 1.
    tb = min(tb, max(128, _round_up(_cdiv(hw, 4), 128)))

    s_total = _cdiv(hw, tb)
    if s_total >= 3 and s_total % 2 == 1:          # prefer an even tile count
        tb2 = max(128, _round_up(_cdiv(hw, s_total + 1), 128))
        if _cdiv(hw, tb2) % 2 == 0:
            tb = tb2
            s_total = _cdiv(hw, tb)
    p = 2 if (s_total >= 2 and s_total % 2 == 0) else 1
    s_per = s_total // p

    # Pad ONLY the cheap targets array (sentinel masks the ragged spatial tail
    # and any padded batch rows).  The logits are never padded or copied.
    hw_pad = s_total * tb
    if hw_pad != hw or n_pad != n:
        tgt = jnp.pad(tgt, ((0, n_pad - n), (0, hw_pad - hw)),
                      constant_values=ignore_val)

    logits_idx = lambda nb, pi, si: (nb, 0, pi * s_per + si)
    tgt_idx = lambda nb, pi, si: (nb, pi * s_per + si)

    # Triple-buffer the logits stream when tiles are tiny (many short strided
    # per-class DMA chunks) and there is spatial depth to hide them behind.
    logits_tile_bytes = bn * c * tb * isz
    if s_total >= 4 and logits_tile_bytes <= (512 << 10):
        logits_spec = pl.BlockSpec((bn, c, tb), logits_idx,
                                   pipeline_mode=pl.Buffered(3))
    else:
        logits_spec = pl.BlockSpec((bn, c, tb), logits_idx)

    need = bpp * tb
    vmem_limit = int(min(vmem_cap * 3 // 4, max(16 << 20, need * 7 // 4)))

    cost = pl.CostEstimate(
        flops=int(6 * n * hw * c),
        transcendentals=int(n * hw * (c + 1)),
        bytes_accessed=int(logits.size * isz + tgt.size * tsz
                           + n_chunks * p * bn * tb * 4),
    )

    kernel = functools.partial(_ce_kernel, ignore_val=ignore_val)

    partial_sums = pl.pallas_call(
        kernel,
        out_shape=jax.ShapeDtypeStruct((n_chunks, p, bn, tb), jnp.float32),
        grid_spec=pltpu.PrefetchScalarGridSpec(
            num_scalar_prefetch=0,
            grid=(n_chunks, p, s_per),
            in_specs=[
                logits_spec,
                pl.BlockSpec((bn, tb), tgt_idx),
            ],
            out_specs=pl.BlockSpec(
                (pl.Squeezed(), pl.Squeezed(), bn, tb),
                lambda nb, pi, si: (nb, pi, 0, 0)),
        ),
        compiler_params=pltpu.CompilerParams(
            dimension_semantics=("parallel", "parallel", "arbitrary"),
            vmem_limit_bytes=vmem_limit,
        ),
        cost_estimate=cost,
    )(logits, tgt)

    total = jnp.sum(partial_sums)
    if ignore_index is None:
        denom = jnp.float32(n * h * w)       # NLLLoss 'mean' with weight=None
    else:
        denom = jnp.sum(targets != ignore_index).astype(jnp.float32)
    return total / denom


def _reference(outputs, targets, ignore_index=None):
    # pure-JAX reference: mean over pixels of -log_softmax(outputs, 1)[target]
    logp = jax.nn.log_softmax(outputs.astype(jnp.float32), axis=1)
    picked = jnp.take_along_axis(
        logp, targets[:, None, :, :].astype(jnp.int32), axis=1)[:, 0]
    nll = -picked
    if ignore_index is None:
        return jnp.mean(nll)
    mask = targets != ignore_index
    return jnp.sum(jnp.where(mask, nll, 0.0)) / jnp.sum(mask)


if __name__ == "__main__":
    key = jax.random.PRNGKey(0)
    k1, k2, k3, k4 = jax.random.split(key, 4)

    # 1) small aligned case (shapes implied by the module).
    N, C, H, W = 2, 4, 16, 16
    x1 = jax.random.normal(k1, (N, C, H, W), dtype=jnp.float32)
    t1 = jax.random.randint(k2, (N, H, W), 0, C, dtype=jnp.int32)
    loss1 = cross_entropy_loss_2d(x1, t1)
    jax.block_until_ready(loss1)
    ref1 = _reference(x1, t1)
    assert jnp.allclose(loss1, ref1, rtol=1e-5, atol=1e-5), (loss1, ref1)

    # 2) ragged H*W (not a multiple of 128) + ignore_index: exercises the
    #    no-pad logits path with in-kernel masking of the partial edge tile.
    N2, C2, H2, W2 = 2, 5, 17, 19
    x2 = jax.random.normal(k3, (N2, C2, H2, W2), dtype=jnp.float32)
    t2 = jax.random.randint(k4, (N2, H2, W2), 0, C2, dtype=jnp.int32)
    loss2 = cross_entropy_loss_2d(x2, t2, ignore_index=3)
    jax.block_until_ready(loss2)
    ref2 = _reference(x2, t2, ignore_index=3)
    assert jnp.allclose(loss2, ref2, rtol=1e-5, atol=1e-5), (loss2, ref2)

    # 3) bf16 logits path (DMA'd as bf16, cast to f32 in-kernel).
    x3 = x1.astype(jnp.bfloat16)
    loss3 = cross_entropy_loss_2d(x3, t1)
    jax.block_until_ready(loss3)
    ref3 = _reference(x3, t1)
    assert jnp.allclose(loss3, ref3, rtol=1e-4, atol=1e-4), (loss3, ref3)

    print("KERNEL_OK")
</pallas_src>

<mosaic_0001>
module attributes {stable_mosaic.version = 11 : i64} {
  func.func @_ce_kernel(%arg0: i32, %arg1: i32, %arg2: i32, %arg3: memref<2x4x128xf32, #tpu.memory_space<vmem>>, %arg4: memref<2x128xi16, #tpu.memory_space<vmem>>, %arg5: memref<1x1x2x128xf32, #tpu.memory_space<vmem>>) attributes {dimension_semantics = [#tpu.dimension_semantics<parallel>, #tpu.dimension_semantics<parallel>, #tpu.dimension_semantics<arbitrary>], iteration_bounds = array<i64: 1, 2, 1>, scalar_prefetch = 0 : i64, scratch_operands = 0 : i64, tpu.core_type = #tpu.core_type<tc>, window_params = [{transform_indices = @transform_0, window_bounds = array<i64: 2, 4, 128>}, {transform_indices = @transform_1, window_bounds = array<i64: 2, 128>}, {transform_indices = @transform_2, window_bounds = array<i64: 1, 1, 2, 128>}]} {
    %c0_i32 = arith.constant 0 : i32
    %0 = arith.cmpi eq, %arg2, %c0_i32 : i32
    %1 = arith.extui %0 : i1 to i32
    %c0_i32_0 = arith.constant 0 : i32
    %2 = arith.cmpi ne, %1, %c0_i32_0 : i32
    scf.if %2 {
      %cst_17 = arith.constant 0.000000e+00 : f32
      %31 = vector.broadcast %cst_17 : f32 to vector<2x128xf32>
      %c0_18 = arith.constant 0 : index
      %c0_19 = arith.constant 0 : index
      %c0_20 = arith.constant 0 : index
      %c0_21 = arith.constant 0 : index
      %32 = vector.load %arg5[%c0_18, %c0_19, %c0_20, %c0_21] : memref<1x1x2x128xf32, #tpu.memory_space<vmem>>, vector<1x1x2x128xf32>
      %33 = vector.shape_cast %32 : vector<1x1x2x128xf32> to vector<2x128xf32>
      %34 = vector.shape_cast %31 : vector<2x128xf32> to vector<1x1x2x128xf32>
      tpu.vector_store %arg5[%c0_18, %c0_19, %c0_20, %c0_21], %34 {strides = array<i32>} : memref<1x1x2x128xf32, #tpu.memory_space<vmem>>, vector<1x1x2x128xf32>,
    } else {
    }
    %c0 = arith.constant 0 : index
    %c0_1 = arith.constant 0 : index
    %c0_2 = arith.constant 0 : index
    %3 = vector.load %arg3[%c0, %c0_1, %c0_2] : memref<2x4x128xf32, #tpu.memory_space<vmem>>, vector<2x4x128xf32>
    %c0_3 = arith.constant 0 : index
    %c0_4 = arith.constant 0 : index
    %4 = vector.load %arg4[%c0_3, %c0_4] : memref<2x128xi16, #tpu.memory_space<vmem>>, vector<2x128xi16>
    %5 = arith.extsi %4 : vector<2x128xi16> to vector<2x128xi32>
    %cst = arith.constant dense<0xFF800000> : vector<2x128xf32>
    %6 = vector.multi_reduction <maximumf>, %3, %cst [1] : vector<2x4x128xf32> to vector<2x128xf32>
    %7 = vector.shape_cast %6 : vector<2x128xf32> to vector<2x1x128xf32>
    %8 = vector.broadcast %7 : vector<2x1x128xf32> to vector<2x4x128xf32>
    %9 = arith.subf %3, %8 : vector<2x4x128xf32>
    %10 = math.exp %9 : vector<2x4x128xf32>
    %cst_5 = arith.constant dense<0.000000e+00> : vector<2x128xf32>
    %11 = vector.multi_reduction <add>, %10, %cst_5 [1] : vector<2x4x128xf32> to vector<2x128xf32>
    %12 = tpu.iota {dimensions = array<i32: 1>} : vector<2x4x128xi32>
    %13 = vector.shape_cast %5 : vector<2x128xi32> to vector<2x1x128xi32>
    %14 = vector.broadcast %13 : vector<2x1x128xi32> to vector<2x4x128xi32>
    %15 = arith.cmpi eq, %12, %14 : vector<2x4x128xi32>
    %cst_6 = arith.constant 0.000000e+00 : f32
    %16 = vector.broadcast %cst_6 : f32 to vector<2x4x128xf32>
    %17 = arith.select %15, %9, %16 : vector<2x4x128xi1>, vector<2x4x128xf32>
    %cst_7 = arith.constant dense<0.000000e+00> : vector<2x128xf32>
    %18 = vector.multi_reduction <add>, %17, %cst_7 [1] : vector<2x4x128xf32> to vector<2x128xf32>
    %c-1_i32 = arith.constant -1 : i32
    %19 = vector.broadcast %c-1_i32 : i32 to vector<2x128xi32>
    %20 = arith.cmpi ne, %5, %19 : vector<2x128xi32>
    %c0_8 = arith.constant 0 : index
    %c0_9 = arith.constant 0 : index
    %c0_10 = arith.constant 0 : index
    %c0_11 = arith.constant 0 : index
    %21 = vector.load %arg5[%c0_8, %c0_9, %c0_10, %c0_11] : memref<1x1x2x128xf32, #tpu.memory_space<vmem>>, vector<1x1x2x128xf32>
    %22 = vector.shape_cast %21 : vector<1x1x2x128xf32> to vector<2x128xf32>
    %23 = math.log %11 : vector<2x128xf32>
    %24 = arith.subf %23, %18 : vector<2x128xf32>
    %cst_12 = arith.constant 0.000000e+00 : f32
    %25 = vector.broadcast %cst_12 : f32 to vector<2x128xf32>
    %26 = arith.select %20, %24, %25 : vector<2x128xi1>, vector<2x128xf32>
    %27 = arith.addf %22, %26 : vector<2x128xf32>
    %c0_13 = arith.constant 0 : index
    %c0_14 = arith.constant 0 : index
    %c0_15 = arith.constant 0 : index
    %c0_16 = arith.constant 0 : index
    %28 = vector.load %arg5[%c0_13, %c0_14, %c0_15, %c0_16] : memref<1x1x2x128xf32, #tpu.memory_space<vmem>>, vector<1x1x2x128xf32>
    %29 = vector.shape_cast %28 : vector<1x1x2x128xf32> to vector<2x128xf32>
    %30 = vector.shape_cast %27 : vector<2x128xf32> to vector<1x1x2x128xf32>
    tpu.vector_store %arg5[%c0_13, %c0_14, %c0_15, %c0_16], %30 {strides = array<i32>} : memref<1x1x2x128xf32, #tpu.memory_space<vmem>>, vector<1x1x2x128xf32>,
    return
  }
  func.func @transform_0(%arg0: i32, %arg1: i32, %arg2: i32) -> (i32, i32, i32) {
    %c1_i32 = arith.constant 1 : i32
    %0 = arith.muli %arg1, %c1_i32 : i32
    %1 = arith.addi %0, %arg2 : i32
    %c0_i32 = arith.constant 0 : i32
    %c0_i32_0 = arith.constant 0 : i32
    return %arg0, %c0_i32, %1 : i32, i32, i32
  }
  func.func @transform_1(%arg0: i32, %arg1: i32, %arg2: i32) -> (i32, i32) {
    %c1_i32 = arith.constant 1 : i32
    %0 = arith.muli %arg1, %c1_i32 : i32
    %1 = arith.addi %0, %arg2 : i32
    %c0_i32 = arith.constant 0 : i32
    return %arg0, %1 : i32, i32
  }
  func.func @transform_2(%arg0: i32, %arg1: i32, %arg2: i32) -> (i32, i32, i32, i32) {
    %c0_i32 = arith.constant 0 : i32
    %c0_i32_0 = arith.constant 0 : i32
    %c0_i32_1 = arith.constant 0 : i32
    return %arg0, %arg1, %c0_i32, %c0_i32_0 : i32, i32, i32, i32
  }
}

</mosaic_0001>

<bundles_post_ra>
// kernel: cross_entropy_loss_2d.1
= control target key start
LH: loop header
LB: loop body
LE: loop exit
PB: predicated region body
PF: predicated region fallthrough
CT: control target
= control target key end

     0   :  { %s590_s9 = smov 0   ;;  %s592_s10 = smov 0   ;;  %s682_s0 = inlined_call_operand.vmem [shape: f32[2,4,256], index: 0, kind: input, shape index: {}]   ;;  %s683_s1 = inlined_call_operand.vmem [shape: s16[2,256], index: 1, kind: input, shape index: {}]   ;;  %s684_s2 = inlined_call_operand.vmem [shape: f32[1,2,2,128], index: 2, kind: output, shape index: {}]  }
   0x1   :  { %s594_s11 = smov 0   ;;  %s596_s12 = smov 0  }
   0x2   :  { %s598_s13 = smov 0  }
   0x3 LB: > { %s27_s14 = sadd.s32 1, %s568_s12  ;;  %p49_p1 = scmp.ne.s32.totalorder %s560_s10, %s556_s9  ;;  %s572_s13 = sphi %s598_s13, %s12_s13   ;;  %s568_s12 = sphi %s596_s12, %s688_s12   ;;  %s564_s11 = sphi %s594_s11, %s687_s11   ;;  %s560_s10 = sphi %s592_s10, %s686_s10   ;;  %s556_s9 = sphi %s590_s9, %s685_s9  }
   0x4   : > { %p29_p0 = scmp.ge.s32.totalorder %s27_s14, 2  ;;  %p50_p2 = scmp.eq.s32.totalorder %s572_s13, 0 }
   0x5   : > { %s42_s16 = sadd.s32 1, %s560_s10  ;;  %p477_p5 = scmp.ge.s32.totalorder %s572_s13, 2 }
   0x6   : > { %s690_s14 = smov (%p29_p0, %s27_s14), 0  ;;  %p51_p3 = por %p50_p2, %p49_p1 }
   0x7   : > { %s38_s15 = ssub.s32 %s568_s12, %s690_s14  ;;  %133 = sbr.rel (%p477_p5) target bundleno = 18 (0x12), region = 16 }
   0x8   : > { %p40_p4 = scmp.eq.s32.totalorder %s38_s15, 0 }
   0xa   : > { %s625_s17 = scalar_select %p40_p4, %s560_s10, %s42_s16  }
   0xc   : > { %136 = sbr.rel (!%p51_p3) target bundleno = 18 (0x12), region = 20  ;;  %s138_s18 = sand.u32 (%p51_p3), 1, %s560_s10  }
   0xd   : > { %s479_s19 = sshll.u32 (%p51_p3), %s568_s12, 2  ;;  %s478_s20 = sshll.u32 (%p51_p3), %s138_s18, 3 }
   0xe   : > { %s146_s23 = scalar_lea.vmem (%p51_p3), %s682_s0, %s479_s19  ;;  %s140_s24 = scalar_lea.vmem (%p51_p3), [#allocation2], %s478_s20 }
   0xf   : > { %v163_v0 = vld [vmem:[%s146_s23] sm:$0xf] (%p51_p3)  ;;  %v165_v1 = vld [vmem:[%s146_s23 + $0x8] sm:$0xf] (%p51_p3) }
  0x10   : > { %164 = vst [vmem:[%s140_s24] sm:$0xf] (%p51_p3), %v163_v0 }
  0x11   : > { %166 = vst [vmem:[%s140_s24 + $0x4] sm:$0xf] %v165_v1 }
  0x12 PF: > { %p480_p6 = scmp.ge.s32.totalorder %s572_s13, 1  ;;  %p205_p7 = scmp.lt.s32.totalorder %s572_s13, 3 }
  0x14   : > { %p206_p8 = pnand %p480_p6, %p205_p7 }
  0x15   : > { %p249_p9 = scmp.lt.s32.totalorder (!%p206_p8), %s564_s11, 1  ;;  %s212_s25 = sand.u32 (!%p206_p8), 1, %s556_s9  }
  0x16   : > { %209 = sbr.rel (%p206_p8) target bundleno = 87 (0x57), region = 65  ;;  %s481_s26 = sshll.u32 (!%p206_p8), %s212_s25, 3 }
  0x17   : > { %s214_s3 = scalar_lea.vmem (!%p206_p8), [#allocation2], %s481_s26 }
  0x1b   : > { %s692_s11 = smov (!%p249_p9, %s564_s11), 1  ;;  %vm272_vm0 = vcmask 1043456   ;;  %v268_v2 = vld [vmem:[%s214_s3] sm:$0xf]  ;;  %v269_v3 = vld [vmem:[%s214_s3 + $0x4] sm:$0xf]  ;;  %v307_v20 = vlaneseq }
  0x1c   : > { %s253_s29 = scalar_lea.vmem %s683_s1, %s692_s11  ;;  %s482_s30 = sshll.u32 %s692_s11, 1  ;;  %v273_v5 = vsel %vm272_vm0, %v268_v2, -inf  ;;  %v280_v6 = vsel %vm272_vm0, %v269_v3, -inf  ;;  %v574_v7 = vmov 0.0   ;;  %vm312_vm1 = vcmask 1040384  }
  0x1d   : > { %s644_s6 = scalar_lea.vmem %s684_s2, %s482_s30  ;;  %v270_v4 = vld [vmem:[%s253_s29] sm:$0x1]  ;;  %v274_v9 = vrot.slane %v273_v5, 4  ;;  %v281_v10 = vrot.slane %v280_v6, 4  ;;  %vm314_vm2 = vcmask 1042434   ;;  %vm318_vm3 = vcmask 1041409  }
  0x1e   : > { %267 = vst [vmem:[%s644_s6] sm:$0x3] %v574_v7  ;;  %v649_v8 = vunpack.c.l.b16 %v270_v4  ;;  %vm320_vm4 = vcmask 1043459   ;;  %vm316_vm5 = vcmask 1041408   ;;  %vm322_vm6 = vcmask 1042433  }
  0x1f   : > { %v275_v11 = vmax.f32 %v273_v5, %v274_v9  ;;  %v282_v12 = vmax.f32 %v280_v6, %v281_v10  ;;  %v308_v30 = vshrl.u32 %v307_v20, 7  ;;  %vm362_vm9 = vcmask 1045509  }
  0x20   : > { %v309_v13 = vrot.slane %v649_v8, 1  ;;  %v310_v14 = vrot.slane %v649_v8, 2  ;;  %v311_v15 = vrot.slane %v649_v8, 3  ;;  %vm364_vm10 = vcmask 1047559  }
  0x21   : > { %v276_v16 = vrot.slane %v275_v11, 2  ;;  %v283_v17 = vrot.slane %v282_v12, 2  ;;  %vm345_vm11 = vcmp.ne.s32.totalorder %v649_v8, 4294967295 }
  0x22   : > { %v313_v18 = vsel %vm312_vm1, %v649_v8, %v309_v13  ;;  %v319_v19 = vsel %vm318_vm3, %v649_v8, %v309_v13  ;;  %v315_v21 = vsel %vm314_vm2, %v310_v14, %v311_v15  ;;  %v321_v22 = vsel %vm320_vm4, %v310_v14, %v311_v15 }
  0x23   : > { %v277_v23 = vmax.f32 %v275_v11, %v276_v16  ;;  %v284_v24 = vmax.f32 %v282_v12, %v283_v17  ;;  %v317_v25 = vsel %vm316_vm5, %v313_v18, %v315_v21  ;;  %v323_v26 = vsel %vm322_vm6, %v319_v19, %v321_v22 }
  0x24   : > { %v324_v27 = vrot.slane %v323_v26, 1  ;;  %v325_v31 = vperm.slane %v317_v25, 0 }
  0x25   : > { %v278_v28 = vrot.slane %v277_v23, 1  ;;  %v285_v29 = vrot.slane %v284_v24, 1  ;;  %v346_v17 = vld [vmem:[%s644_s6] sm:$0x3] }
  0x26   : > { %v326_v32 = vperm.slane %v324_v27, 0  ;;  %vm327_vm7 = vcmp.eq.s32.totalorder %v308_v30, %v325_v31 }
  0x27   : > { %v279_v33 = vmax.f32 %v277_v23, %v278_v28  ;;  %v286_v34 = vmax.f32 %v284_v24, %v285_v29 }
  0x28   : > { %vm328_vm8 = vcmp.eq.s32.totalorder %v308_v30, %v326_v32 }
  0x29   : > { %v287_v35 = vsub.f32 %v268_v2, %v279_v33  ;;  %v288_v36 = vsub.f32 %v269_v3, %v286_v34 }
  0x2b   : > { %v289_v37 = vmul.f32 1.442695, %v287_v35  ;;  %v291_v38 = vmul.f32 1.442695, %v288_v36  ;;  %v329_v39 = vsel %vm327_vm7, %v287_v35, 0.0  ;;  %v330_v40 = vsel %vm328_vm8, %v288_v36, 0.0 }
  0x2c   : > { %v331_v41 = vsel %vm272_vm0, %v329_v39, 0.0  ;;  %v338_v42 = vsel %vm272_vm0, %v330_v40, 0.0 }
  0x2d   : > { %526 = vpow2.f32 %v289_v37  ;;  %v332_v44 = vrot.slane %v331_v41, 4  ;;  %v339_v45 = vrot.slane %v338_v42, 4 }
  0x2e   : > { %528 = vpow2.f32 %v291_v38 }
  0x2f   : > { %v333_v52 = vadd.f32 %v332_v44, %v331_v41  ;;  %v340_v53 = vadd.f32 %v339_v45, %v338_v42 }
  0x31   : > { %v334_v58 = vrot.slane %v333_v52, 2  ;;  %v341_v59 = vrot.slane %v340_v53, 2 }
  0x33   : > { %v527_v43 = vpop.eup %526  ;;  %v335_v0 = vadd.f32 %v334_v58, %v333_v52  ;;  %v342_v1 = vadd.f32 %v341_v59, %v340_v53 }
  0x34   : > { %v529_v46 = vpop.eup %528  ;;  %v293_v47 = vsel %vm272_vm0, %v527_v43, 0.0 }
  0x35   : > { %v294_v48 = vrot.slane %v293_v47, 4  ;;  %v300_v49 = vsel %vm272_vm0, %v529_v46, 0.0  ;;  %v336_v3 = vrot.slane %v335_v0, 1  ;;  %v343_v4 = vrot.slane %v342_v1, 1 }
  0x36   : > { %v301_v50 = vrot.slane %v300_v49, 4 }
  0x37   : > { %v295_v51 = vadd.f32 %v294_v48, %v293_v47  ;;  %v337_v6 = vadd.f32 %v336_v3, %v335_v0  ;;  %v344_v7 = vadd.f32 %v343_v4, %v342_v1 }
  0x38   : > { %v302_v54 = vadd.f32 %v301_v50, %v300_v49 }
  0x39   : > { %v296_v55 = vrot.slane %v295_v51, 2 }
  0x3a   : > { %v303_v56 = vrot.slane %v302_v54, 2 }
  0x3b   : > { %v297_v57 = vadd.f32 %v296_v55, %v295_v51 }
  0x3c   : > { %v304_v60 = vadd.f32 %v303_v56, %v302_v54 }
  0x3d   : > { %v298_v61 = vrot.slane %v297_v57, 1 }
  0x3e   : > { %v305_v62 = vrot.slane %v304_v60, 1 }
  0x3f   : > { %v299_v63 = vadd.f32 %v298_v61, %v297_v57 }
  0x40   : > { %v306_v2 = vadd.f32 %v305_v62, %v304_v60 }
  0x41   : > { %530 = vlog2.f32 %v299_v63 }
  0x42   : > { %532 = vlog2.f32 %v306_v2 }
  0x47   : > { %v531_v5 = vpop.eup %530 }
  0x48   : > { %v533_v9 = vpop.eup %532  ;;  %v348_v10 = vmul.f32 0.6931472, %v531_v5 }
  0x49   : > { %v350_v11 = vmul.f32 0.6931472, %v533_v9 }
  0x4a   : > { %v351_v12 = vsub.f32 %v348_v10, %v337_v6 }
  0x4b   : > { %v352_v13 = vsub.f32 %v350_v11, %v344_v7 }
  0x4d   : > { %v359_v14 = vrot.slane %v352_v13, 7 }
  0x4f   : > { %v360_v15 = vsel %vm318_vm3, %v359_v14, %v351_v12 }
  0x50   : > { %v361_v16 = vsel %vm320_vm4, %v359_v14, %v360_v15 }
  0x51   : > { %v363_v18 = vsel %vm362_vm9, %v359_v14, %v361_v16 }
  0x52   : > { %v365_v19 = vsel %vm364_vm10, %v359_v14, %v363_v18 }
  0x53   : > { %v367_v20 = vsel %vm345_vm11, %v365_v19, 0.0 }
  0x54   : > { %v368_v21 = vadd.f32 %v367_v20, %v346_v17 }
  0x56   : > { %369 = vst [vmem:[%s644_s6] sm:$0x3] %v368_v21 }
  0x57 PF: > { %s12_s13 = sadd.s32 1, %s572_s13   ;;  %s685_s9 = smov %s560_s10 }
  0x58   : > { %p9_p10 = scmp.ge.s32.totalorder %s12_s13, 4   ;;  %s686_s10 = smov %s625_s17 }
  0x59   : > { %s687_s11 = smov %s568_s12  ;;  %s688_s12 = smov %s690_s14 }
  0x5a   :  { %11 = sbr.rel (!%p9_p10) target bundleno = 3 (0x3), region = 111 }

</bundles_post_ra>
